<compile_context>
chip_gen: v7x
topology: tpu7x:2x2x1
jax: 0.10.0
libtpu: 0.0.40
codegen_flags: <defaults>
</compile_context>

<pallas_src>
import functools

import jax
import jax.numpy as jnp
from jax.experimental import pallas as pl
from jax.experimental.pallas import tpu as pltpu

_MAX_LANE = 1024          # preferred lane-dense last dim (multiple of 128)
_TARGET_TILE_BYTES = 2 << 20   # ~2 MiB per pipeline buffer
_SMALL_TOTAL = 1024       # below this many elements, pure-JAX fast path


def _prob_converter_kernel(t_ref, b_ref, x_ref, o_ref, *, min_p):
    # Scalar parameters (temperature already softplus'd) live in SMEM.
    t = t_ref[0]
    b = b_ref[0]
    # Compute in f32 regardless of I/O dtype.
    xf = x_ref[...].astype(jnp.float32)
    full_p = jax.nn.sigmoid((xf + b) * t)
    # _rescale_range(full_p, (0,1), (min_p, 1-min_p)); elide when identity.
    if min_p != 0.0:
        full_p = full_p * (1.0 - 2.0 * min_p) + min_p
    o_ref[...] = full_p.astype(o_ref.dtype)


def _pick_lane(total):
    """Largest lane width in {1024,512,256,128} dividing `total`, else None."""
    for lane in (1024, 512, 256, 128):
        if total % lane == 0:
            return lane
    return None


def probability_converter(x, temperature, bias, *, min_p=0.0):
    """Pallas implementation of ProbabilityConverter.forward (trainable_dim=1)."""
    # TODO(synk): trainable_dim > 1 (per-last-dim parameters) not implemented.
    assert temperature.size == 1 and bias.size == 1, "kernel assumes trainable_dim == 1"

    orig_shape = x.shape
    orig_dtype = x.dtype
    total = x.size

    # Hoist the scalar softplus out of the kernel (one scalar op, done once).
    t = jax.nn.softplus(temperature.astype(jnp.float32)).reshape((1,))
    b = bias.astype(jnp.float32).reshape((1,))
    min_p = float(min_p)

    # Fast path: pallas_call fixed overhead dominates for KiB-scale tensors.
    if total < _SMALL_TOTAL:
        p = jax.nn.sigmoid((x.astype(jnp.float32) + b[0]) * t[0])
        if min_p != 0.0:
            p = p * (1.0 - 2.0 * min_p) + min_p
        return p.astype(orig_dtype)

    # Lane-dense slab: flatten, pick a lane width that divides total (free
    # reshape, no copy); otherwise pad up to 1024 (ragged fallback).
    xflat = x.reshape(-1)
    lane = _pick_lane(total)
    pad = 0
    if lane is None:
        lane = _MAX_LANE
        pad = (-total) % lane
        xflat = jnp.pad(xflat, (0, pad))
    m = xflat.size // lane
    x2 = xflat.reshape(m, lane)

    # Row tile: ~2 MiB per buffer (f32 worst case), multiple of 16 sublanes so
    # bf16-packed layouts stay aligned; full extent when M is small. Pallas
    # handles the ragged last block when m % tm != 0.
    rows = max(16, (_TARGET_TILE_BYTES // (lane * 4)) // 16 * 16)
    tm = rows if m > rows else m
    grid = (pl.cdiv(m, tm),)

    kernel = functools.partial(_prob_converter_kernel, min_p=min_p)

    out = pl.pallas_call(
        kernel,
        out_shape=jax.ShapeDtypeStruct((m, lane), orig_dtype),
        grid_spec=pltpu.PrefetchScalarGridSpec(
            num_scalar_prefetch=0,
            grid=grid,
            in_specs=[
                pl.BlockSpec(memory_space=pltpu.SMEM),       # softplus(temperature) [1]
                pl.BlockSpec(memory_space=pltpu.SMEM),       # bias                  [1]
                pl.BlockSpec((tm, lane), lambda i: (i, 0)),  # x tile (lane-dense)
            ],
            out_specs=pl.BlockSpec((tm, lane), lambda i: (i, 0)),
        ),
        compiler_params=pltpu.CompilerParams(
            dimension_semantics=("parallel",),
        ),
    )(t, b, x2)

    out = out.reshape(-1)
    if pad:
        out = out[:total]
    return out.reshape(orig_shape)


def _init_parameters(trainable_dim=1,
                     initial_temperature=1.0,
                     initial_probability=0.5,
                     initial_x=0.0,
                     min_p=0.0):
    """Deterministic parameter init mirroring ProbabilityConverter.reset_parameters."""
    temperature = jnp.full((trainable_dim,), initial_temperature, dtype=jnp.float32)
    range_p = 1.0 - min_p * 2.0
    p = (initial_probability - min_p) / range_p
    initial_bias = -(jnp.log((1.0 - p) / p) / initial_temperature + initial_x)
    bias = jnp.full((trainable_dim,), initial_bias, dtype=jnp.float32)
    return temperature, bias


def _reference(x, temperature, bias, min_p=0.0):
    t = jax.nn.softplus(temperature.astype(jnp.float32))
    p = jax.nn.sigmoid((x.astype(jnp.float32) + bias.astype(jnp.float32)) * t)
    if min_p != 0.0:
        p = p * (1.0 - 2.0 * min_p) + min_p
    return p


if __name__ == "__main__":
    key = jax.random.PRNGKey(0)
    temperature, bias = _init_parameters(trainable_dim=1)

    # 1) Main small NCHW-like input (Pallas kernel, lane=1024, no padding).
    x = jax.random.normal(key, (2, 4, 16, 16), dtype=jnp.float32)
    p = jax.block_until_ready(probability_converter(x, temperature, bias, min_p=0.0))
    ref = _reference(x, temperature, bias)
    assert p.shape == x.shape and p.dtype == x.dtype
    assert jnp.max(jnp.abs(p - ref)) < 1e-5

    # 2) Flat size not a multiple of 128 (ragged pad fallback path).
    k2 = jax.random.fold_in(key, 1)
    x_ragged = jax.random.normal(k2, (3, 5, 7, 11), dtype=jnp.float32)
    p_ragged = jax.block_until_ready(
        probability_converter(x_ragged, temperature, bias, min_p=0.0))
    ref_ragged = _reference(x_ragged, temperature, bias)
    assert p_ragged.shape == x_ragged.shape
    assert jnp.max(jnp.abs(p_ragged - ref_ragged)) < 1e-5

    # 3) Flat size a multiple of 128 but not 1024 (adaptive lane, no padding).
    k3 = jax.random.fold_in(key, 2)
    x_128 = jax.random.normal(k3, (2, 3, 4, 128), dtype=jnp.float32)
    p_128 = jax.block_until_ready(
        probability_converter(x_128, temperature, bias, min_p=0.0))
    assert jnp.max(jnp.abs(p_128 - _reference(x_128, temperature, bias))) < 1e-5

    # 4) bf16 input: dtype-preserving I/O, f32 math inside the kernel.
    k4 = jax.random.fold_in(key, 3)
    x_bf16 = jax.random.normal(k4, (2, 4, 16, 16), dtype=jnp.bfloat16)
    p_bf16 = jax.block_until_ready(
        probability_converter(x_bf16, temperature, bias, min_p=0.0))
    ref_bf16 = _reference(x_bf16, temperature, bias).astype(jnp.bfloat16)
    assert p_bf16.dtype == jnp.bfloat16
    assert jnp.max(jnp.abs(p_bf16.astype(jnp.float32)
                           - ref_bf16.astype(jnp.float32))) < 1e-2

    # 5) Tiny input exercises the pure-JAX fast path.
    x_tiny = jax.random.normal(jax.random.fold_in(key, 4), (2, 4, 8), dtype=jnp.float32)
    p_tiny = jax.block_until_ready(
        probability_converter(x_tiny, temperature, bias, min_p=0.0))
    assert jnp.max(jnp.abs(p_tiny - _reference(x_tiny, temperature, bias))) < 1e-5

    print("KERNEL_OK")
</pallas_src>

<mosaic_0001>
module attributes {stable_mosaic.version = 11 : i64} {
  func.func @_prob_converter_kernel(%arg0: i32, %arg1: memref<1xf32, #tpu.memory_space<smem>>, %arg2: memref<1xf32, #tpu.memory_space<smem>>, %arg3: memref<2x1024xf32, #tpu.memory_space<vmem>>, %arg4: memref<2x1024xf32, #tpu.memory_space<vmem>>) attributes {dimension_semantics = [#tpu.dimension_semantics<parallel>], iteration_bounds = array<i64: 1>, scalar_prefetch = 0 : i64, scratch_operands = 0 : i64, tpu.core_type = #tpu.core_type<tc>, window_params = [{transform_indices = @transform_0, window_bounds = array<i64: 1>}, {transform_indices = @transform_1, window_bounds = array<i64: 1>}, {transform_indices = @transform_2, window_bounds = array<i64: 2, 1024>}, {transform_indices = @transform_3, window_bounds = array<i64: 2, 1024>}]} {
    %c0 = arith.constant 0 : index
    %0 = memref.load %arg1[%c0] : memref<1xf32, #tpu.memory_space<smem>>
    %c0_0 = arith.constant 0 : index
    %1 = memref.load %arg2[%c0_0] : memref<1xf32, #tpu.memory_space<smem>>
    %c0_1 = arith.constant 0 : index
    %c0_2 = arith.constant 0 : index
    %2 = vector.load %arg3[%c0_1, %c0_2] : memref<2x1024xf32, #tpu.memory_space<vmem>>, vector<2x1024xf32>
    %3 = vector.broadcast %1 : f32 to vector<2x1024xf32>
    %4 = arith.addf %2, %3 : vector<2x1024xf32>
    %5 = vector.broadcast %0 : f32 to vector<2x1024xf32>
    %6 = arith.mulf %4, %5 : vector<2x1024xf32>
    %7 = arith.negf %6 : vector<2x1024xf32>
    %8 = math.exp %7 : vector<2x1024xf32>
    %cst = arith.constant 1.000000e+00 : f32
    %9 = vector.broadcast %cst : f32 to vector<2x1024xf32>
    %10 = arith.addf %9, %8 : vector<2x1024xf32>
    %11 = arith.divf %9, %10 : vector<2x1024xf32>
    %c0_3 = arith.constant 0 : index
    %c0_4 = arith.constant 0 : index
    %12 = vector.load %arg4[%c0_3, %c0_4] : memref<2x1024xf32, #tpu.memory_space<vmem>>, vector<2x1024xf32>
    tpu.vector_store %arg4[%c0_3, %c0_4], %11 {strides = array<i32>} : memref<2x1024xf32, #tpu.memory_space<vmem>>, vector<2x1024xf32>,
    return
  }
  func.func @transform_0(%arg0: i32) -> i32 {
    %c0_i32 = arith.constant 0 : i32
    %c0_i32_0 = arith.constant 0 : i32
    return %c0_i32 : i32
  }
  func.func @transform_1(%arg0: i32) -> i32 {
    %c0_i32 = arith.constant 0 : i32
    %c0_i32_0 = arith.constant 0 : i32
    return %c0_i32 : i32
  }
  func.func @transform_2(%arg0: i32) -> (i32, i32) {
    %c0_i32 = arith.constant 0 : i32
    %c0_i32_0 = arith.constant 0 : i32
    return %arg0, %c0_i32 : i32, i32
  }
  func.func @transform_3(%arg0: i32) -> (i32, i32) {
    %c0_i32 = arith.constant 0 : i32
    %c0_i32_0 = arith.constant 0 : i32
    return %arg0, %c0_i32 : i32, i32
  }
}

</mosaic_0001>

<bundles_post_ra>
// kernel: tpu_custom_call.1
= control target key start
LH: loop header
LB: loop body
LE: loop exit
PB: predicated region body
PF: predicated region fallthrough
CT: control target
= control target key end

     0   :  { %10 = vsyncpa [#allocation5], 0  ;;  %s180_s0 = inlined_call_operand.<no memory space> [shape: f32[1], index: 0, kind: input, shape index: {}]   ;;  %s181_s1 = inlined_call_operand.<no memory space> [shape: f32[1], index: 1, kind: input, shape index: {}]   ;;  %s182_s2 = inlined_call_operand.hbm [shape: f32[2,1024], index: 2, kind: input, shape index: {}]   ;;  %s183_s3 = inlined_call_operand.hbm [shape: f32[2,1024], index: 3, kind: output, shape index: {}]  }
   0x1   :  { %11 = vsyncpa [#allocation6], 0  ;;  %s128_s12 = smov [#allocation4]   ;;  %s80_s16 = scalar_lea.hbm %s182_s2, 256 }
   0x2   :  { %s22_s13 = sshll.u32 %s128_s12, 4  ;;  %p81_p0 = scmp.ne.s32.totalorder %s182_s2, %s80_s16  ;;  %s23_s13 = int_to_ptr.vmem [resolvable:$true] %s22_s13 }
   0x3   :  { %p84_p1 = scmp.lt.u32.totalorder %s80_s16, %s182_s2 }
   0x5   :  { %p86_p2 = pnand %p84_p1, %p81_p0 }
   0x7   :  { %89 = shalt.err (!%p86_p2)
}
   0x8   :  { %s90_s21 = scalar_lea.vmem %s23_s13, 256  ;;  %p95_p4 = scmp.lt.s32.totalorder %s23_s13, %s23_s13 }
   0x9   :  { %p91_p3 = scmp.ne.s32.totalorder %s23_s13, %s90_s21  ;;  %p96_p5 = scmp.lt.s32.totalorder %s90_s21, %s90_s21 }
   0xb   :  { %p97_p6 = por %p96_p5, %p95_p4 }
   0xd   :  { %p98_p7 = pnand %p97_p6, %p91_p3 }
   0xf   :  { %101 = shalt.err (!%p98_p7)
}
  0x10   :  { %25 = dma.hbm_to_vmem [thread:$0]  %s182_s2, 256, %s23_s13, [#allocation5]  }
  0x11   :  { %124 = dma.done.wait [#allocation5], 256  }
  0x12   :  { %125 = vsyncadd [#allocation5], 4294967040  ;;  %v33_v0 = vstv %s181_s1  ;;  %v31_v1 = vld [vmem:[#allocation4] sm:$0xff]  ;;  %v36_v2 = vstv %s180_s0  ;;  %v32_v3 = vld [vmem:[#allocation4 + $0x8] sm:$0xff]  ;;  %s129_s1 = smov [#allocation7]  }
  0x13   :  { %v34_v4 = vadd.f32 %v33_v0, %v31_v1  ;;  %v35_v5 = vadd.f32 %v33_v0, %v32_v3  ;;  %s59_s2 = sshll.u32 %s129_s1, 4  ;;  %s60_s2 = int_to_ptr.vmem [resolvable:$true] %s59_s2 }
  0x14   :  { %s102_s0 = scalar_lea.vmem %s60_s2, 256  ;;  %p107_p9 = scmp.lt.s32.totalorder %s60_s2, %s60_s2 }
  0x15   :  { %v37_v6 = vmul.f32 %v36_v2, %v34_v4  ;;  %v38_v7 = vmul.f32 %v36_v2, %v35_v5  ;;  %p103_p8 = scmp.ne.s32.totalorder %s60_s2, %s102_s0  ;;  %p108_p10 = scmp.lt.s32.totalorder %s102_s0, %s102_s0 }
  0x17   :  { %v68_v8 = vmul.f32 -1.442695, %v37_v6  ;;  %v69_v9 = vmul.f32 -1.442695, %v38_v7  ;;  %p109_p11 = por %p108_p10, %p107_p9 }
  0x19   :  { %72 = vpow2.f32 %v68_v8  ;;  %p110_p12 = pnand %p109_p11, %p103_p8 }
  0x1a   :  { %74 = vpow2.f32 %v69_v9 }
  0x23   :  { %v73_v10 = vpop.eup %72 }
  0x24   :  { %v75_v11 = vpop.eup %74  ;;  %v45_v12 = vadd.f32 1.0, %v73_v10 }
  0x25   :  { %v46_v13 = vadd.f32 1.0, %v75_v11 }
  0x26   :  { %76 = vrcp.f32 %v45_v12 }
  0x27   :  { %78 = vrcp.f32 %v46_v13 }
  0x30   :  { %v77_v14 = vpop.eup %76 }
  0x31   :  { %v79_v15 = vpop.eup %78  ;;  %51 = vst [vmem:[#allocation7] sm:$0xff] %v77_v14 }
  0x32   :  { %52 = vst [vmem:[#allocation7 + $0x8] sm:$0xff] %v79_v15 }
  0x33   :  { %113 = shalt.err (!%p110_p12)
}
  0x34   :  { %s114_s30 = scalar_lea.hbm %s183_s3, 256 }
  0x35   :  { %p115_p13 = scmp.ne.s32.totalorder %s183_s3, %s114_s30  ;;  %p118_p0 = scmp.lt.u32.totalorder %s114_s30, %s183_s3 }
  0x37   :  { %p120_p1 = pnand %p118_p0, %p115_p13 }
  0x39   :  { %123 = shalt.err (!%p120_p1)
}
  0x3a   :  { %62 = dma.vmem_to_hbm [thread:$0]  %s60_s2, 256, %s183_s3, [#allocation6]  }
  0x3b   :  { %126 = dma.done.wait [#allocation6], 256  }
  0x3c   :  { %127 = vsyncadd [#allocation6], 4294967040 }
  0x3d   :  { %66 = vsyncpa [#allocation5], 1 }
  0x3e   :  { %67 = vsyncpa [#allocation6], 1 }

</bundles_post_ra>
